<compile_context>
chip_gen: v7x
topology: tpu7x:2x2x1
jax: 0.10.0
libtpu: 0.0.40
codegen_flags: <defaults>
</compile_context>

<pallas_src>
import jax
import jax.numpy as jnp
from jax.experimental import pallas as pl
from jax.experimental.pallas import tpu as pltpu

D_REAL = 12          # 1 + 5 + 1 + 5
K_SAMPLES = 8        # sublane-aligned number of posterior samples
HALF_LOG_2PI = 0.9189385332046727


def q_sample_kernel(params_ref, eps_ref, z_ref, logq_ref):
    m = params_ref[0:1, :]        # (1, D)
    logs = params_ref[1:2, :]     # (1, D)
    eps = eps_ref[...]            # (K, D)

    sigma = jnp.exp(logs)                         # EUP transcendental
    z_ref[...] = m + sigma * eps                  # reparameterized sample (VPU)

    # Standard-normal form of the Gaussian log-pdf: (z - m)/sigma == eps.
    logpdf = -0.5 * eps * eps - logs              # (K, D), logs broadcasts
    logq_ref[...] = (jnp.sum(logpdf, axis=-1, keepdims=True)   # XLU reduce -> (K,1)
                     - jnp.float32(D_REAL * HALF_LOG_2PI))


def q_forward(m_all, logs_all, eps):
    """m_all, logs_all: [D_REAL] f32;  eps: [K_SAMPLES, D_REAL] f32."""
    # Single small parameter tile: row 0 = means, row 1 = log-std.
    params = jnp.stack([m_all, logs_all]).astype(jnp.float32)   # (2, D_REAL)

    z, logq = pl.pallas_call(
        q_sample_kernel,
        out_shape=(
            jax.ShapeDtypeStruct((K_SAMPLES, D_REAL), jnp.float32),
            jax.ShapeDtypeStruct((K_SAMPLES, 1), jnp.float32),
        ),
        in_specs=[
            pl.BlockSpec(memory_space=pltpu.MemorySpace.VMEM),
            pl.BlockSpec(memory_space=pltpu.MemorySpace.VMEM),
        ],
        out_specs=(
            pl.BlockSpec(memory_space=pltpu.MemorySpace.VMEM),
            pl.BlockSpec(memory_space=pltpu.MemorySpace.VMEM),
        ),
    )(params, eps.astype(jnp.float32))

    # Split back into the trace entries, mirroring tr['mu'], tr['phi'], ...
    trace = {
        "mu": z[:, 0:1],
        "phi": z[:, 1:6],
        "psi": z[:, 6:7],
        "gamma": z[:, 7:12],
    }
    return trace, logq[:, 0]


if __name__ == "__main__":
    # Deterministic parameter init, matching nn.Parameter(t.zeros(...)) in __init__.
    m_mu = jnp.zeros((1,), jnp.float32)
    log_s_mu = jnp.zeros((1,), jnp.float32)
    m_phi = jnp.zeros((5,), jnp.float32)
    log_s_phi = jnp.zeros((5,), jnp.float32)
    m_psi = jnp.zeros((1,), jnp.float32)
    log_s_psi = jnp.zeros((1,), jnp.float32)
    m_gamma = jnp.zeros((5,), jnp.float32)
    log_s_gamma = jnp.zeros((5,), jnp.float32)

    m_all = jnp.concatenate([m_mu, m_phi, m_psi, m_gamma])
    logs_all = jnp.concatenate([log_s_mu, log_s_phi, log_s_psi, log_s_gamma])

    # eps is generated on the host so the result is bit-checkable against a
    # plain-JAX reference.
    # TODO(synk): for a pure on-chip path, generate eps in-kernel with
    # pltpu.prng_seed + pltpu.stateful_normal (changes the random stream).
    key = jax.random.PRNGKey(0)
    eps = jax.random.normal(key, (K_SAMPLES, D_REAL), jnp.float32)

    trace, logq = q_forward(m_all, logs_all, eps)
    jax.block_until_ready((trace, logq))

    # Reference check in plain JAX.
    sigma = jnp.exp(logs_all)
    z_ref = m_all[None, :] + sigma[None, :] * eps
    logq_ref = jnp.sum(-0.5 * eps**2 - logs_all[None, :] - HALF_LOG_2PI, axis=-1)
    z_kernel = jnp.concatenate(
        [trace["mu"], trace["phi"], trace["psi"], trace["gamma"]], axis=-1)
    assert jnp.allclose(z_kernel, z_ref, atol=1e-5, rtol=1e-5)
    assert jnp.allclose(logq, logq_ref, atol=1e-4, rtol=1e-5)

    # TODO(synk): the alan.Normal trace-registration side effect itself (lazy
    # distribution objects on `tr`) has no Pallas equivalent; the kernel
    # implements the sampling + log-density math those distributions exist for.
    print("KERNEL_OK")
</pallas_src>

<mosaic_0001>
module attributes {stable_mosaic.version = 11 : i64} {
  func.func @q_sample_kernel(%arg0: memref<2x12xf32, #tpu.memory_space<vmem>>, %arg1: memref<8x12xf32, #tpu.memory_space<vmem>>, %arg2: memref<8x12xf32, #tpu.memory_space<vmem>>, %arg3: memref<8x1xf32, #tpu.memory_space<vmem>>) attributes {dimension_semantics = [], scalar_prefetch = 0 : i64, scratch_operands = 0 : i64, tpu.core_type = #tpu.core_type<tc>} {
    %c0 = arith.constant 0 : index
    %c0_0 = arith.constant 0 : index
    %0 = vector.load %arg0[%c0, %c0_0] : memref<2x12xf32, #tpu.memory_space<vmem>>, vector<1x12xf32>
    %c1 = arith.constant 1 : index
    %c0_1 = arith.constant 0 : index
    %1 = vector.load %arg0[%c1, %c0_1] : memref<2x12xf32, #tpu.memory_space<vmem>>, vector<1x12xf32>
    %c0_2 = arith.constant 0 : index
    %c0_3 = arith.constant 0 : index
    %2 = vector.load %arg1[%c0_2, %c0_3] : memref<8x12xf32, #tpu.memory_space<vmem>>, vector<8x12xf32>
    %3 = math.exp %1 : vector<1x12xf32>
    %4 = vector.broadcast %3 : vector<1x12xf32> to vector<8x12xf32>
    %5 = arith.mulf %4, %2 : vector<8x12xf32>
    %6 = vector.broadcast %0 : vector<1x12xf32> to vector<8x12xf32>
    %7 = arith.addf %6, %5 : vector<8x12xf32>
    %c0_4 = arith.constant 0 : index
    %c0_5 = arith.constant 0 : index
    %8 = vector.load %arg2[%c0_4, %c0_5] : memref<8x12xf32, #tpu.memory_space<vmem>>, vector<8x12xf32>
    tpu.vector_store %arg2[%c0_4, %c0_5], %7 {strides = array<i32>} : memref<8x12xf32, #tpu.memory_space<vmem>>, vector<8x12xf32>,
    %cst = arith.constant -5.000000e-01 : f32
    %9 = vector.broadcast %cst : f32 to vector<8x12xf32>
    %10 = arith.mulf %9, %2 : vector<8x12xf32>
    %11 = arith.mulf %10, %2 : vector<8x12xf32>
    %12 = vector.broadcast %1 : vector<1x12xf32> to vector<8x12xf32>
    %13 = arith.subf %11, %12 : vector<8x12xf32>
    %cst_6 = arith.constant dense<0.000000e+00> : vector<8xf32>
    %14 = vector.multi_reduction <add>, %13, %cst_6 [1] : vector<8x12xf32> to vector<8xf32>
    %15 = vector.shape_cast %14 : vector<8xf32> to vector<8x1xf32>
    %cst_7 = arith.constant 11.0272627 : f32
    %16 = vector.broadcast %cst_7 : f32 to vector<8x1xf32>
    %17 = arith.subf %15, %16 : vector<8x1xf32>
    %c0_8 = arith.constant 0 : index
    %c0_9 = arith.constant 0 : index
    %18 = vector.load %arg3[%c0_8, %c0_9] : memref<8x1xf32, #tpu.memory_space<vmem>>, vector<8x1xf32>
    tpu.vector_store %arg3[%c0_8, %c0_9], %17 {strides = array<i32>} : memref<8x1xf32, #tpu.memory_space<vmem>>, vector<8x1xf32>,
    return
  }
}

</mosaic_0001>

<bundles_post_ra>
// kernel: tpu_custom_call.1
= control target key start
LH: loop header
LB: loop body
LE: loop exit
PB: predicated region body
PF: predicated region fallthrough
CT: control target
= control target key end

     0   :  { %9 = vsyncpa [#allocation3], 0  ;;  %s229_s0 = inlined_call_operand.hbm [shape: f32[2,12], index: 0, kind: input, shape index: {}]   ;;  %s230_s1 = inlined_call_operand.hbm [shape: f32[8,12], index: 1, kind: input, shape index: {}]   ;;  %s231_s2 = inlined_call_operand.hbm [shape: f32[8,12], index: 2, kind: output, shape index: {0}]   ;;  %s232_s3 = inlined_call_operand.vmem [shape: f32[8,1], index: 3, kind: output, shape index: {1}]  }
   0x1   :  { %10 = vsyncpa [#allocation6], 0 }
   0x2   :  { %11 = vsyncpa [#allocation4], 0  ;;  %s167_s12 = smov [#allocation2]   ;;  %s168_s14 = smov [#allocation5]  }
   0x3   :  { %s18_s13 = sshll.u32 %s167_s12, 4  ;;  %s28_s15 = sshll.u32 %s168_s14, 4  ;;  %s19_s13 = int_to_ptr.vmem [resolvable:$true] %s18_s13  ;;  %s29_s15 = int_to_ptr.vmem [resolvable:$true] %s28_s15 }
   0x4   :  { %s95_s18 = scalar_lea.hbm %s229_s0, 32 }
   0x5   :  { %p96_p0 = scmp.ne.s32.totalorder %s229_s0, %s95_s18  ;;  %p99_p1 = scmp.lt.u32.totalorder %s95_s18, %s229_s0 }
   0x7   :  { %p101_p2 = pnand %p99_p1, %p96_p0 }
   0x9   :  { %104 = shalt.err (!%p101_p2)
}
   0xa   :  { %s105_s23 = scalar_lea.vmem %s19_s13, 32  ;;  %p110_p4 = scmp.lt.s32.totalorder %s19_s13, %s19_s13 }
   0xb   :  { %p106_p3 = scmp.ne.s32.totalorder %s19_s13, %s105_s23  ;;  %p111_p5 = scmp.lt.s32.totalorder %s105_s23, %s105_s23 }
   0xd   :  { %p112_p6 = por %p111_p5, %p110_p4 }
   0xf   :  { %p113_p7 = pnand %p112_p6, %p106_p3 }
  0x11   :  { %116 = shalt.err (!%p113_p7)
}
  0x12   :  { %21 = dma.hbm_to_vmem [thread:$0]  %s229_s0, 32, %s19_s13, [#allocation3]  }
  0x13   :  { %s117_s28 = scalar_lea.hbm %s230_s1, 128 }
  0x14   :  { %p118_p8 = scmp.ne.s32.totalorder %s230_s1, %s117_s28  ;;  %p121_p9 = scmp.lt.u32.totalorder %s117_s28, %s230_s1 }
  0x16   :  { %p123_p10 = pnand %p121_p9, %p118_p8 }
  0x18   :  { %126 = shalt.err (!%p123_p10)
}
  0x19   :  { %s127_s6 = scalar_lea.vmem %s29_s15, 128  ;;  %p132_p12 = scmp.lt.s32.totalorder %s29_s15, %s29_s15 }
  0x1a   :  { %p128_p11 = scmp.ne.s32.totalorder %s29_s15, %s127_s6  ;;  %p133_p13 = scmp.lt.s32.totalorder %s127_s6, %s127_s6 }
  0x1c   :  { %p134_p0 = por %p133_p13, %p132_p12 }
  0x1e   :  { %p135_p1 = pnand %p134_p0, %p128_p11 }
  0x20   :  { %138 = shalt.err (!%p135_p1)
}
  0x21   :  { %31 = dma.hbm_to_vmem [thread:$0]  %s230_s1, 128, %s29_s15, [#allocation6]  }
  0x22   :  { %161 = dma.done.wait [#allocation3], 32  }
  0x23   :  { %162 = vsyncadd [#allocation3], 4294967264 }
  0x24   :  { %163 = dma.done.wait [#allocation6], 128  }
  0x25   :  { %164 = vsyncadd [#allocation6], 4294967168  ;;  %v43_v0 = vlaneseq  ;;  %v39_v3 = vld [vmem:[#allocation2 + $0x1] sm:$0x1]  ;;  %v40_v4 = vld [vmem:[#allocation5] sm:$0xff]  ;;  %vm53_vm0 = vcmask 97280  }
  0x26   :  { %v41_v5 = vmul.f32 1.442695, %v39_v3  ;;  %v55_v6 = vmul.f32 -0.5, %v40_v4  ;;  %v88_v14 = vld [vmem:[#allocation2] ss:$0 sm:$0xff]  ;;  %s169_s1 = smov [#allocation7]  }
  0x27   :  { %v44_v1 = vshrl.u32 %v43_v0, 7  ;;  %s74_s8 = sshll.u32 %s169_s1, 4  ;;  %s75_s8 = int_to_ptr.vmem [resolvable:$true] %s74_s8 }
  0x28   :  { %93 = vpow2.f32 %v41_v5  ;;  %v56_v8 = vmul.f32 %v55_v6, %v40_v4  ;;  %s139_s9 = scalar_lea.vmem %s75_s8, 128  ;;  %p144_p3 = scmp.lt.s32.totalorder %s75_s8, %s75_s8 }
  0x29   :  { %v45_v2 = vsub.s32 0, %v44_v1  ;;  %p140_p2 = scmp.ne.s32.totalorder %s75_s8, %s139_s9  ;;  %p145_p4 = scmp.lt.s32.totalorder %s139_s9, %s139_s9 }
  0x2b   :  { %v60_v7 = vrot.slane %v39_v3, %v45_v2  ;;  %p146_p5 = por %p145_p4, %p144_p3 }
  0x2d   :  { %v61_v9 = vsub.f32 %v56_v8, %v60_v7  ;;  %p147_p6 = pnand %p146_p5, %p140_p2 }
  0x2f   :  { %v62_v10 = vsel %vm53_vm0, %v61_v9, 0.0 }
  0x30   :  { %63 = vadd.xlane.f32.xlu0 %v62_v10 }
  0x32   :  { %v94_v11 = vpop.eup %93 }
  0x33   :  { %v46_v12 = vrot.slane %v94_v11, %v45_v2 }
  0x35   :  { %v47_v13 = vmul.f32 %v46_v12, %v40_v4 }
  0x37   :  { %v52_v15 = vadd.f32 %v88_v14, %v47_v13 }
  0x39   :  { %54 = vst.msk [vmem:[#allocation7] sm:$0xff] %vm53_vm0, %v52_v15 }
  0x3a   :  { %150 = shalt.err (!%p147_p6)
}
  0x3b   :  { %s151_s12 = scalar_lea.hbm %s231_s2, 128 }
  0x3c   :  { %p152_p7 = scmp.ne.s32.totalorder %s231_s2, %s151_s12  ;;  %p155_p8 = scmp.lt.u32.totalorder %s151_s12, %s231_s2 }
  0x3e   :  { %p157_p9 = pnand %p155_p8, %p152_p7 }
  0x40   :  { %160 = shalt.err (!%p157_p9)
}
  0x41   :  { %77 = dma.vmem_to_hbm [thread:$0]  %s75_s8, 128, %s231_s2, [#allocation4]   ;;  %vm66_vm1 = vcmask 7168  }
  0xbd   :  { %v64_v16 = vpop.xlane.xlu0 %63 }
  0xbe   :  { %v89_v17 = vadd.f32 -11.027263, %v64_v16 }
  0xc0   :  { %67 = vst.msk [vmem:[%s232_s3] sm:$0xff] %vm66_vm1, %v89_v17 }
  0xc1   :  { %165 = dma.done.wait [#allocation4], 128  }
  0xc2   :  { %166 = vsyncadd [#allocation4], 4294967168 }
  0xc3   :  { %85 = vsyncpa [#allocation3], 1 }
  0xc4   :  { %86 = vsyncpa [#allocation6], 1 }
  0xc5   :  { %87 = vsyncpa [#allocation4], 1 }

</bundles_post_ra>
